<compile_context>
chip_gen: v5e
topology: v5e:2x2
jax: 0.10.0
libtpu: 0.0.40
codegen_flags: <defaults>
</compile_context>

<pallas_src>
import jax
import jax.numpy as jnp
from jax import lax
from jax.experimental import pallas as pl
from jax.experimental.pallas import tpu as pltpu


def _round_up(x, m):
    return ((x + m - 1) // m) * m


def _cdiv(a, b):
    return (a + b - 1) // b


def _critic_kernel(state_ref, action_ref, w1s_ref, w1a_ref, w2_ref, small_ref,
                   out_ref):
    # Packed small tensors (always f32): row0=b1, row1=b2, row2=w3^T, row3=b3.
    small = small_ref[...]                      # (8, H)
    b1 = small[0:1, :]                          # (1, H)
    b2 = small[1:2, :]                          # (1, H)
    b3 = small[3:4, 0:1]                        # (1, 1)

    # Layer 1: cat([state, action], 1) @ W1 + b1, fused as a split matmul
    # (MXU, f32 accumulation).
    h1 = jnp.dot(state_ref[...], w1s_ref[...],
                 preferred_element_type=jnp.float32)
    h1 = h1 + jnp.dot(action_ref[...], w1a_ref[...],
                      preferred_element_type=jnp.float32)
    h1 = jnp.maximum(h1 + b1, 0.0)              # ReLU (f32 VPU)

    # Layer 2: h1 @ W2 + b2, ReLU.
    h2 = jnp.dot(h1, w2_ref[...], preferred_element_type=jnp.float32) + b2
    h2 = jnp.maximum(h2, 0.0)                   # (TB, H)

    # Layer 3, lane-dense: small(8,H) x h2(TB,H)^T -> (8, TB); row 2 is
    # w3 . h2[b], i.e. the critic value with batch on the lane axis.
    z = lax.dot_general(small, h2, (((1,), (1,)), ((), ())),
                        preferred_element_type=jnp.float32)   # (8, TB)
    v = z[2:3, :] + b3                                         # (1, TB)

    out_ref[0] = v.astype(out_ref.dtype)        # out_ref: (1, 1, TB)


def critic_forward(state, action, params, *, block_batch=2048,
                   compute_dtype=None, vmem_limit_bytes=None):
    """Pallas-call wrapper.

    block_batch: batch tile size (rounded to a multiple of 128). 2048 is a
                 safe default on all generations; sweep 2048-4096 on v6e/v7x
                 (raise vmem_limit_bytes when going past ~4096).
    compute_dtype: optionally cast state/action/W1/W2 (e.g. jnp.bfloat16) to
                   halve HBM traffic; accumulation stays f32.
    """
    w1s, w1a, b1, w2, b2, w3, b3 = params
    H = w2.shape[1]

    # Pack the tiny per-layer vectors into one pinned f32 slab (6 streams total).
    small = jnp.zeros((8, H), jnp.float32)
    small = small.at[0, :].set(b1.astype(jnp.float32).reshape(H))
    small = small.at[1, :].set(b2.astype(jnp.float32).reshape(H))
    small = small.at[2, :].set(w3.astype(jnp.float32).reshape(H))
    small = small.at[3, :].set(b3.astype(jnp.float32).reshape(()))

    if compute_dtype is not None:
        cast = lambda a: a.astype(compute_dtype)
        state, action = cast(state), cast(action)
        w1s, w1a, w2 = cast(w1s), cast(w1a), cast(w2)

    B, sd = state.shape
    ad = action.shape[1]

    # Batch tile: multiple of 128 (lane-dense output), capped by block_batch.
    TB = max(128, min(_round_up(block_batch, 128), _round_up(B, 128)))
    # v7x megacore: with dimension_semantics=("parallel",) both TensorCores
    # only get work if there are >= 2 tiles; halve the tile when needed.
    if B > 128 and _cdiv(B, TB) < 2:
        TB = max(128, _round_up(_cdiv(B, 2), 128))
    Bp = _round_up(B, TB)
    if Bp != B:
        pad = Bp - B
        state = jnp.pad(state, ((0, pad), (0, 0)))
        action = jnp.pad(action, ((0, pad), (0, 0)))
    G = Bp // TB

    batched = lambda d: pl.BlockSpec((TB, d), lambda i: (i, 0))
    pinned = lambda a: pl.BlockSpec(a.shape, lambda i: (0,) * a.ndim)

    act_item = jnp.dtype(state.dtype).itemsize
    w_item = jnp.dtype(w2.dtype).itemsize
    cost = pl.CostEstimate(
        flops=2 * Bp * ((sd + ad) * H + H * H + H),
        transcendentals=0,
        bytes_accessed=(Bp * (sd + ad) * act_item + Bp * 4
                        + (sd * H + ad * H + H * H) * w_item + 8 * H * 4),
    )

    out = pl.pallas_call(
        _critic_kernel,
        out_shape=jax.ShapeDtypeStruct((G, 1, TB), jnp.float32),
        grid=(G,),
        in_specs=[batched(sd), batched(ad),
                  pinned(w1s), pinned(w1a), pinned(w2), pinned(small)],
        # Lane-dense output block: (1, 1, TB) with TB a multiple of 128.
        out_specs=pl.BlockSpec((1, 1, TB), lambda i: (i, 0, 0)),
        compiler_params=pltpu.CompilerParams(
            dimension_semantics=("parallel",),
            vmem_limit_bytes=vmem_limit_bytes),
        cost_estimate=cost,
    )(state, action, w1s, w1a, w2, small)

    # (G, 1, TB) row-major flatten is exactly batch order; drop padding.
    return out.reshape(Bp)[:B].reshape(B, 1)


def init_params(key, state_dim, action_dim, hidden=32):
    """Deterministic init mimicking torch.nn.Linear default:
    U(-1/sqrt(fan_in), 1/sqrt(fan_in)). Weights stored as (in, out)."""
    in1 = state_dim + action_dim
    ks = jax.random.split(key, 6)

    def uni(k, shape, fan_in):
        bound = 1.0 / jnp.sqrt(fan_in)
        return jax.random.uniform(k, shape, jnp.float32, -bound, bound)

    w1 = uni(ks[0], (in1, hidden), in1)
    b1 = uni(ks[1], (1, hidden), in1)
    w2 = uni(ks[2], (hidden, hidden), hidden)
    b2 = uni(ks[3], (1, hidden), hidden)
    w3 = uni(ks[4], (hidden, 1), hidden)
    b3 = uni(ks[5], (1, 1), hidden)

    # Split W1 into state-part and action-part so cat([s, a], 1) fuses in-kernel.
    w1s, w1a = w1[:state_dim], w1[state_dim:]
    return (w1s, w1a, b1, w2, b2, w3, b3)


def critic_reference(state, action, params):
    """Plain-JAX reference for a sanity check."""
    w1s, w1a, b1, w2, b2, w3, b3 = params
    x = jnp.concatenate([state, action], axis=1)
    w1 = jnp.concatenate([w1s, w1a], axis=0)
    h1 = jnp.maximum(x @ w1 + b1, 0.0)
    h2 = jnp.maximum(h1 @ w2 + b2, 0.0)
    return h2 @ w3 + b3


if __name__ == "__main__":
    state_dim, action_dim = 16, 4

    key = jax.random.PRNGKey(0)
    k_state, k_action, k_params = jax.random.split(key, 3)
    params = init_params(k_params, state_dim, action_dim)

    # Small sanity-check shape (single grid tile, padded up to TB=128).
    batch = 8
    state = jax.random.normal(k_state, (batch, state_dim), jnp.float32)
    action = jax.random.normal(k_action, (batch, action_dim), jnp.float32)

    out = jax.block_until_ready(critic_forward(state, action, params))
    ref = critic_reference(state, action, params)
    assert out.shape == (batch, 1), out.shape
    assert jnp.allclose(out, ref, atol=1e-4, rtol=1e-4)

    # Multi-tile + padded path (non-divisible batch, >= 2 grid tiles).
    batch2 = 200
    state2 = jax.random.normal(k_state, (batch2, state_dim), jnp.float32)
    action2 = jax.random.normal(k_action, (batch2, action_dim), jnp.float32)
    out2 = jax.block_until_ready(
        critic_forward(state2, action2, params, block_batch=256))
    ref2 = critic_reference(state2, action2, params)
    assert out2.shape == (batch2, 1), out2.shape
    assert jnp.allclose(out2, ref2, atol=1e-4, rtol=1e-4)

    # bf16 activations/weights path (f32 accumulation): loose-tolerance check.
    out3 = jax.block_until_ready(
        critic_forward(state2, action2, params, block_batch=256,
                       compute_dtype=jnp.bfloat16))
    assert out3.shape == (batch2, 1), out3.shape
    assert jnp.allclose(out3, ref2, atol=1e-1, rtol=1e-1)

    print("KERNEL_OK")
</pallas_src>

<mosaic_0001>
module attributes {stable_mosaic.version = 11 : i64} {
  func.func @_critic_kernel(%arg0: i32, %arg1: memref<128x16xf32, #tpu.memory_space<vmem>>, %arg2: memref<128x4xf32, #tpu.memory_space<vmem>>, %arg3: memref<16x32xf32, #tpu.memory_space<vmem>>, %arg4: memref<4x32xf32, #tpu.memory_space<vmem>>, %arg5: memref<32x32xf32, #tpu.memory_space<vmem>>, %arg6: memref<8x32xf32, #tpu.memory_space<vmem>>, %arg7: memref<1x1x128xf32, #tpu.memory_space<vmem>>) attributes {dimension_semantics = [#tpu.dimension_semantics<parallel>], iteration_bounds = array<i64: 1>, scalar_prefetch = 0 : i64, scratch_operands = 0 : i64, tpu.core_type = #tpu.core_type<tc>, window_params = [{transform_indices = @transform_0, window_bounds = array<i64: 128, 16>}, {transform_indices = @transform_1, window_bounds = array<i64: 128, 4>}, {pipeline_mode = #tpu.pipeline_mode<synchronous>, transform_indices = @transform_2, window_bounds = array<i64: 16, 32>}, {pipeline_mode = #tpu.pipeline_mode<synchronous>, transform_indices = @transform_3, window_bounds = array<i64: 4, 32>}, {pipeline_mode = #tpu.pipeline_mode<synchronous>, transform_indices = @transform_4, window_bounds = array<i64: 32, 32>}, {pipeline_mode = #tpu.pipeline_mode<synchronous>, transform_indices = @transform_5, window_bounds = array<i64: 8, 32>}, {transform_indices = @transform_6, window_bounds = array<i64: 1, 1, 128>}]} {
    %c0 = arith.constant 0 : index
    %c0_0 = arith.constant 0 : index
    %0 = vector.load %arg6[%c0, %c0_0] : memref<8x32xf32, #tpu.memory_space<vmem>>, vector<8x32xf32>
    %1 = vector.extract_strided_slice %0 {offsets = [0, 0], sizes = [1, 32], strides = [1, 1]} : vector<8x32xf32> to vector<1x32xf32>
    %2 = vector.extract_strided_slice %0 {offsets = [1, 0], sizes = [1, 32], strides = [1, 1]} : vector<8x32xf32> to vector<1x32xf32>
    %3 = vector.extract_strided_slice %0 {offsets = [3, 0], sizes = [1, 1], strides = [1, 1]} : vector<8x32xf32> to vector<1x1xf32>
    %c0_1 = arith.constant 0 : index
    %c0_2 = arith.constant 0 : index
    %4 = vector.load %arg1[%c0_1, %c0_2] : memref<128x16xf32, #tpu.memory_space<vmem>>, vector<128x16xf32>
    %c0_3 = arith.constant 0 : index
    %c0_4 = arith.constant 0 : index
    %5 = vector.load %arg3[%c0_3, %c0_4] : memref<16x32xf32, #tpu.memory_space<vmem>>, vector<16x32xf32>
    %cst = arith.constant dense<0.000000e+00> : vector<128x32xf32>
    %6 = tpu.matmul %4, %5, %cst {dimension_numbers = #tpu.dot_dimension_numbers<[1], [0], [0], [1], [0, 0, 1, 1], [], []>} : vector<128x16xf32>, vector<16x32xf32>, vector<128x32xf32> -> vector<128x32xf32>
    %c0_5 = arith.constant 0 : index
    %c0_6 = arith.constant 0 : index
    %7 = vector.load %arg2[%c0_5, %c0_6] : memref<128x4xf32, #tpu.memory_space<vmem>>, vector<128x4xf32>
    %c0_7 = arith.constant 0 : index
    %c0_8 = arith.constant 0 : index
    %8 = vector.load %arg4[%c0_7, %c0_8] : memref<4x32xf32, #tpu.memory_space<vmem>>, vector<4x32xf32>
    %cst_9 = arith.constant dense<0.000000e+00> : vector<128x32xf32>
    %9 = tpu.matmul %7, %8, %cst_9 {dimension_numbers = #tpu.dot_dimension_numbers<[1], [0], [0], [1], [0, 0, 1, 1], [], []>} : vector<128x4xf32>, vector<4x32xf32>, vector<128x32xf32> -> vector<128x32xf32>
    %10 = arith.addf %6, %9 : vector<128x32xf32>
    %11 = vector.broadcast %1 : vector<1x32xf32> to vector<128x32xf32>
    %12 = arith.addf %10, %11 : vector<128x32xf32>
    %cst_10 = arith.constant 0.000000e+00 : f32
    %13 = vector.broadcast %cst_10 : f32 to vector<128x32xf32>
    %14 = arith.maximumf %12, %13 : vector<128x32xf32>
    %c0_11 = arith.constant 0 : index
    %c0_12 = arith.constant 0 : index
    %15 = vector.load %arg5[%c0_11, %c0_12] : memref<32x32xf32, #tpu.memory_space<vmem>>, vector<32x32xf32>
    %cst_13 = arith.constant dense<0.000000e+00> : vector<128x32xf32>
    %16 = tpu.matmul %14, %15, %cst_13 {dimension_numbers = #tpu.dot_dimension_numbers<[1], [0], [0], [1], [0, 0, 1, 1], [], []>} : vector<128x32xf32>, vector<32x32xf32>, vector<128x32xf32> -> vector<128x32xf32>
    %17 = vector.broadcast %2 : vector<1x32xf32> to vector<128x32xf32>
    %18 = arith.addf %16, %17 : vector<128x32xf32>
    %cst_14 = arith.constant 0.000000e+00 : f32
    %19 = vector.broadcast %cst_14 : f32 to vector<128x32xf32>
    %20 = arith.maximumf %18, %19 : vector<128x32xf32>
    %cst_15 = arith.constant dense<0.000000e+00> : vector<8x128xf32>
    %21 = tpu.matmul %0, %20, %cst_15 {dimension_numbers = #tpu.dot_dimension_numbers<[1], [1], [0], [0], [0, 0, 1, 0], [], []>} : vector<8x32xf32>, vector<128x32xf32>, vector<8x128xf32> -> vector<8x128xf32>
    %22 = vector.extract_strided_slice %21 {offsets = [2, 0], sizes = [1, 128], strides = [1, 1]} : vector<8x128xf32> to vector<1x128xf32>
    %23 = vector.broadcast %3 : vector<1x1xf32> to vector<1x128xf32>
    %24 = arith.addf %22, %23 : vector<1x128xf32>
    %c0_16 = arith.constant 0 : index
    %c0_17 = arith.constant 0 : index
    %c0_18 = arith.constant 0 : index
    %25 = vector.load %arg7[%c0_16, %c0_17, %c0_18] : memref<1x1x128xf32, #tpu.memory_space<vmem>>, vector<1x1x128xf32>
    %26 = vector.shape_cast %25 : vector<1x1x128xf32> to vector<1x128xf32>
    %27 = vector.shape_cast %24 : vector<1x128xf32> to vector<1x1x128xf32>
    tpu.vector_store %arg7[%c0_16, %c0_17, %c0_18], %27 {strides = array<i32>} : memref<1x1x128xf32, #tpu.memory_space<vmem>>, vector<1x1x128xf32>,
    return
  }
  func.func @transform_0(%arg0: i32) -> (i32, i32) {
    %c0_i32 = arith.constant 0 : i32
    %c0_i32_0 = arith.constant 0 : i32
    return %arg0, %c0_i32 : i32, i32
  }
  func.func @transform_1(%arg0: i32) -> (i32, i32) {
    %c0_i32 = arith.constant 0 : i32
    %c0_i32_0 = arith.constant 0 : i32
    return %arg0, %c0_i32 : i32, i32
  }
  func.func @transform_2(%arg0: i32) -> (i32, i32) {
    %c0_i32 = arith.constant 0 : i32
    %c0_i32_0 = arith.constant 0 : i32
    %c0_i32_1 = arith.constant 0 : i32
    return %c0_i32, %c0_i32_0 : i32, i32
  }
  func.func @transform_3(%arg0: i32) -> (i32, i32) {
    %c0_i32 = arith.constant 0 : i32
    %c0_i32_0 = arith.constant 0 : i32
    %c0_i32_1 = arith.constant 0 : i32
    return %c0_i32, %c0_i32_0 : i32, i32
  }
  func.func @transform_4(%arg0: i32) -> (i32, i32) {
    %c0_i32 = arith.constant 0 : i32
    %c0_i32_0 = arith.constant 0 : i32
    %c0_i32_1 = arith.constant 0 : i32
    return %c0_i32, %c0_i32_0 : i32, i32
  }
  func.func @transform_5(%arg0: i32) -> (i32, i32) {
    %c0_i32 = arith.constant 0 : i32
    %c0_i32_0 = arith.constant 0 : i32
    %c0_i32_1 = arith.constant 0 : i32
    return %c0_i32, %c0_i32_0 : i32, i32
  }
  func.func @transform_6(%arg0: i32) -> (i32, i32, i32) {
    %c0_i32 = arith.constant 0 : i32
    %c0_i32_0 = arith.constant 0 : i32
    %c0_i32_1 = arith.constant 0 : i32
    return %arg0, %c0_i32, %c0_i32_0 : i32, i32, i32
  }
}

</mosaic_0001>

<bundles_post_ra>
// kernel: tpu_custom_call.1
= control target key start
LH: loop header
LB: loop body
LE: loop exit
PB: predicated region body
PF: predicated region fallthrough
CT: control target
= control target key end

     0   :  { %vm109_vm0 = vcmask 1043456   ;;  %vm60_vm1 = vcmask 31744   ;;  %vm178_vm2 = vcmask 130048   ;;  %s901_s0 = inlined_call_operand.vmem [shape: f32[128,16], index: 0, kind: input, shape index: {}]   ;;  %s902_s1 = inlined_call_operand.vmem [shape: f32[128,4], index: 1, kind: input, shape index: {}]   ;;  %s903_s2 = inlined_call_operand.vmem [shape: f32[16,32], index: 2, kind: input, shape index: {}]   ;;  %s904_s3 = inlined_call_operand.vmem [shape: f32[4,32], index: 3, kind: input, shape index: {}]   ;;  %s905_s4 = inlined_call_operand.vmem [shape: f32[32,32], index: 4, kind: input, shape index: {}]   ;;  %s906_s5 = inlined_call_operand.vmem [shape: f32[8,32], index: 5, kind: input, shape index: {}]   ;;  %s907_s6 = inlined_call_operand.hbm [shape: f32[1,1,128], index: 6, kind: output, shape index: {}]  }
   0x1   :  { %v42_v0 = vld [vmem:[%s903_s2 + $0x8] sm:$0xff]  ;;  %v59_v1 = vld [vmem:[%s904_s3] sm:$0xf] }
   0x2   :  { %v41_v2 = vld [vmem:[%s903_s2] sm:$0xff]  ;;  %241 = vmatpush.msra.mxu1 %v42_v0  ;;  %554 = vmatpush.msk.msra.mxu0 %vm109_vm0, %v59_v1 }
   0x3   :  { %v43_v3 = vld [vmem:[%s902_s1] sm:$0xff] }
   0x4   :  { %v25_v4 = vld [vmem:[%s901_s0] sm:$0xff]  ;;  %555 = vmatmul.msk.f32.vlgmr.msra.gmra.mxu0 %vm60_vm1, %v43_v3  ;;  %242 = vmatpush.msra.mxu1 %v41_v2 }
   0x5   :  { %571 = vmatmul.msk.f32.vlgmr.msra.gmra.mxu1 %vm178_vm2, %v25_v4 }
   0x6   :  { %11 = vsyncpa [#allocation3], 0  ;;  %v44_v5 = vld [vmem:[%s902_s1 + $0x8] sm:$0xff]  ;;  %v45_v7 = vld [vmem:[%s902_s1 + $0x10] sm:$0xff]  ;;  %vm330_vm3 = vcmask 261120   ;;  %s545_s23 = sshll.u32 %s907_s6, 4  ;;  %s546_s23 = int_to_ptr.hbm [resolvable:$true] %s545_s23 }
   0x7   :  { %v26_v6 = vld [vmem:[%s901_s0 + $0x8] sm:$0xff]  ;;  %v27_v8 = vld [vmem:[%s901_s0 + $0x10] sm:$0xff]  ;;  %v46_v9 = vld [vmem:[%s902_s1 + $0x18] sm:$0xff] }
   0x8   :  { %v28_v10 = vld [vmem:[%s901_s0 + $0x18] sm:$0xff]  ;;  %v47_v11 = vld [vmem:[%s902_s1 + $0x20] sm:$0xff]  ;;  %v48_v13 = vld [vmem:[%s902_s1 + $0x28] sm:$0xff] }
   0x9   :  { %v29_v12 = vld [vmem:[%s901_s0 + $0x20] sm:$0xff]  ;;  %v30_v14 = vld [vmem:[%s901_s0 + $0x28] sm:$0xff]  ;;  %v49_v15 = vld [vmem:[%s902_s1 + $0x30] sm:$0xff] }
   0xa   :  { %v31_v16 = vld [vmem:[%s901_s0 + $0x30] sm:$0xff]  ;;  %v50_v17 = vld [vmem:[%s902_s1 + $0x38] sm:$0xff]  ;;  %v51_v19 = vld [vmem:[%s902_s1 + $0x40] sm:$0xff] }
   0xb   :  { %v32_v18 = vld [vmem:[%s901_s0 + $0x38] sm:$0xff]  ;;  %v33_v20 = vld [vmem:[%s901_s0 + $0x40] sm:$0xff]  ;;  %v52_v21 = vld [vmem:[%s902_s1 + $0x48] sm:$0xff] }
   0xc   :  { %556 = vmatmul.msk.f32.gmra.mxu0 %vm60_vm1, %v44_v5  ;;  %v34_v22 = vld [vmem:[%s901_s0 + $0x48] sm:$0xff]  ;;  %v53_v23 = vld [vmem:[%s902_s1 + $0x50] sm:$0xff]  ;;  %v54_v25 = vld [vmem:[%s902_s1 + $0x58] sm:$0xff] }
   0xd   :  { %572 = vmatmul.msk.f32.gmra.mxu1 %vm178_vm2, %v26_v6  ;;  %v35_v24 = vld [vmem:[%s901_s0 + $0x50] sm:$0xff]  ;;  %v36_v26 = vld [vmem:[%s901_s0 + $0x58] sm:$0xff]  ;;  %v55_v27 = vld [vmem:[%s902_s1 + $0x60] sm:$0xff] }
   0xe   :  { %v328_v28 = vld [vmem:[%s905_s4 + $0x18] sm:$0xff]  ;;  %v37_v29 = vld [vmem:[%s901_s0 + $0x60] sm:$0xff]  ;;  %v327_v30 = vld [vmem:[%s905_s4 + $0x10] sm:$0xff] }
   0xf   :  { %391 = vmatpush.msra.mxu2 %v328_v28  ;;  %v326_v31 = vld [vmem:[%s905_s4 + $0x8] sm:$0xff]  ;;  %v325_v32 = vld [vmem:[%s905_s4] sm:$0xff]  ;;  %v57_v35 = vld [vmem:[%s902_s1 + $0x70] sm:$0xff] }
  0x10   :  { %v56_v33 = vld [vmem:[%s902_s1 + $0x68] sm:$0xff]  ;;  %v39_v36 = vld [vmem:[%s901_s0 + $0x70] sm:$0xff]  ;;  %v58_v37 = vld [vmem:[%s902_s1 + $0x78] sm:$0xff] }
  0x11   :  { %392 = vmatpush.msra.mxu2 %v327_v30  ;;  %v38_v34 = vld [vmem:[%s901_s0 + $0x68] sm:$0xff]  ;;  %v40_v38 = vld [vmem:[%s901_s0 + $0x78] sm:$0xff]  ;;  %v838_v39 = vld [vmem:[%s906_s5] sm:$0xff]  ;;  %s650_s0 = smov [#allocation2]  }
  0x12   :  { %v841_v41 = vperm.slane %v838_v39, 0  ;;  %s543_s1 = sshll.u32 %s650_s0, 4  ;;  %s544_s1 = int_to_ptr.vmem [resolvable:$true] %s543_s1 }
  0x13   :  { %393 = vmatpush.msra.mxu2 %v326_v31 }
  0x14   :  { %557 = vmatmul.msk.f32.gmra.mxu0 %vm60_vm1, %v45_v7 }
  0x15   :  { %573 = vmatmul.msk.f32.gmra.mxu1 %vm178_vm2, %v27_v8  ;;  %394 = vmatpush.msra.mxu2 %v325_v32 }
  0x1c   :  { %558 = vmatmul.msk.f32.gmra.mxu0 %vm60_vm1, %v46_v9 }
  0x1d   :  { %574 = vmatmul.msk.f32.gmra.mxu1 %vm178_vm2, %v28_v10 }
  0x24   :  { %559 = vmatmul.msk.f32.gmra.mxu0 %vm60_vm1, %v47_v11 }
  0x25   :  { %575 = vmatmul.msk.f32.gmra.mxu1 %vm178_vm2, %v29_v12 }
  0x2c   :  { %560 = vmatmul.msk.f32.gmra.mxu0 %vm60_vm1, %v48_v13 }
  0x2d   :  { %576 = vmatmul.msk.f32.gmra.mxu1 %vm178_vm2, %v30_v14 }
  0x34   :  { %561 = vmatmul.msk.f32.gmra.mxu0 %vm60_vm1, %v49_v15 }
  0x35   :  { %577 = vmatmul.msk.f32.gmra.mxu1 %vm178_vm2, %v31_v16 }
  0x3c   :  { %562 = vmatmul.msk.f32.gmra.mxu0 %vm60_vm1, %v50_v17 }
  0x3d   :  { %578 = vmatmul.msk.f32.gmra.mxu1 %vm178_vm2, %v32_v18 }
  0x44   :  { %563 = vmatmul.msk.f32.gmra.mxu0 %vm60_vm1, %v51_v19 }
  0x45   :  { %579 = vmatmul.msk.f32.gmra.mxu1 %vm178_vm2, %v33_v20 }
  0x4c   :  { %564 = vmatmul.msk.f32.gmra.mxu0 %vm60_vm1, %v52_v21 }
  0x4d   :  { %580 = vmatmul.msk.f32.gmra.mxu1 %vm178_vm2, %v34_v22 }
  0x54   :  { %565 = vmatmul.msk.f32.gmra.mxu0 %vm60_vm1, %v53_v23 }
  0x55   :  { %581 = vmatmul.msk.f32.gmra.mxu1 %vm178_vm2, %v35_v24 }
  0x5c   :  { %566 = vmatmul.msk.f32.gmra.mxu0 %vm60_vm1, %v54_v25 }
  0x5d   :  { %582 = vmatmul.msk.f32.gmra.mxu1 %vm178_vm2, %v36_v26 }
  0x64   :  { %567 = vmatmul.msk.f32.gmra.mxu0 %vm60_vm1, %v55_v27 }
  0x65   :  { %583 = vmatmul.msk.f32.gmra.mxu1 %vm178_vm2, %v37_v29 }
  0x6c   :  { %568 = vmatmul.msk.f32.gmra.mxu0 %vm60_vm1, %v56_v33 }
  0x6d   :  { %584 = vmatmul.msk.f32.gmra.mxu1 %vm178_vm2, %v38_v34 }
  0x74   :  { %569 = vmatmul.msk.f32.gmra.mxu0 %vm60_vm1, %v57_v35 }
  0x75   :  { %585 = vmatmul.msk.f32.gmra.mxu1 %vm178_vm2, %v39_v36 }
  0x7c   :  { %570 = vmatmul.msk.f32.gmra.mxu0 %vm60_vm1, %v58_v37 }
  0x7d   :  { %586 = vmatmul.msk.f32.gmra.mxu1 %vm178_vm2, %v40_v38 }
  0x81   :  { %v130_v40 = vpop.f32.mrf.mxu0 }
  0x82   :  { %v244_v42 = vpop.f32.mrf.mxu1 }
  0x83   :  { %v245_v43 = vadd.f32 %v244_v42, %v130_v40 }
  0x85   :  { %v293_v44 = vadd.f32 %v841_v41, %v245_v43 }
  0x87   :  { %v309_v45 = vmax.f32 %v293_v44, 0.0 }
  0x89   :  { %v133_v46 = vpop.f32.mrf.mxu0  ;;  %587 = vmatmul.msk.f32.vlgmr.msra.gmra.mxu2 %vm330_vm3, %v309_v45 }
  0x8a   :  { %v247_v47 = vpop.f32.mrf.mxu1 }
  0x8b   :  { %v248_v48 = vadd.f32 %v247_v47, %v133_v46 }
  0x8d   :  { %v294_v49 = vadd.f32 %v841_v41, %v248_v48 }
  0x8f   :  { %v310_v50 = vmax.f32 %v294_v49, 0.0 }
  0x91   :  { %v136_v51 = vpop.f32.mrf.mxu0  ;;  %588 = vmatmul.msk.f32.gmra.mxu2 %vm330_vm3, %v310_v50 }
  0x92   :  { %v250_v52 = vpop.f32.mrf.mxu1 }
  0x93   :  { %v251_v53 = vadd.f32 %v250_v52, %v136_v51 }
  0x95   :  { %v295_v54 = vadd.f32 %v841_v41, %v251_v53 }
  0x97   :  { %v311_v55 = vmax.f32 %v295_v54, 0.0 }
  0x99   :  { %v139_v56 = vpop.f32.mrf.mxu0  ;;  %589 = vmatmul.msk.f32.gmra.mxu2 %vm330_vm3, %v311_v55 }
  0x9a   :  { %v253_v57 = vpop.f32.mrf.mxu1 }
  0x9b   :  { %v254_v58 = vadd.f32 %v253_v57, %v139_v56 }
  0x9d   :  { %v296_v59 = vadd.f32 %v841_v41, %v254_v58 }
  0x9f   :  { %v312_v60 = vmax.f32 %v296_v59, 0.0 }
  0xa1   :  { %v142_v61 = vpop.f32.mrf.mxu0  ;;  %590 = vmatmul.msk.f32.gmra.mxu2 %vm330_vm3, %v312_v60 }
  0xa2   :  { %v256_v62 = vpop.f32.mrf.mxu1 }
  0xa3   :  { %v257_v63 = vadd.f32 %v256_v62, %v142_v61 }
  0xa5   :  { %v297_v0 = vadd.f32 %v841_v41, %v257_v63 }
  0xa7   :  { %v313_v1 = vmax.f32 %v297_v0, 0.0 }
  0xa9   :  { %v145_v2 = vpop.f32.mrf.mxu0  ;;  %591 = vmatmul.msk.f32.gmra.mxu2 %vm330_vm3, %v313_v1 }
  0xaa   :  { %v259_v3 = vpop.f32.mrf.mxu1 }
  0xab   :  { %v260_v4 = vadd.f32 %v259_v3, %v145_v2 }
  0xad   :  { %v298_v5 = vadd.f32 %v841_v41, %v260_v4 }
  0xaf   :  { %v314_v6 = vmax.f32 %v298_v5, 0.0 }
  0xb1   :  { %v148_v7 = vpop.f32.mrf.mxu0  ;;  %592 = vmatmul.msk.f32.gmra.mxu2 %vm330_vm3, %v314_v6 }
  0xb2   :  { %v262_v8 = vpop.f32.mrf.mxu1 }
  0xb3   :  { %v263_v9 = vadd.f32 %v262_v8, %v148_v7 }
  0xb5   :  { %v299_v10 = vadd.f32 %v841_v41, %v263_v9 }
  0xb7   :  { %v315_v11 = vmax.f32 %v299_v10, 0.0 }
  0xb9   :  { %v151_v12 = vpop.f32.mrf.mxu0  ;;  %593 = vmatmul.msk.f32.gmra.mxu2 %vm330_vm3, %v315_v11 }
  0xba   :  { %v265_v13 = vpop.f32.mrf.mxu1 }
  0xbb   :  { %v266_v14 = vadd.f32 %v265_v13, %v151_v12 }
  0xbd   :  { %v300_v15 = vadd.f32 %v841_v41, %v266_v14 }
  0xbf   :  { %v316_v16 = vmax.f32 %v300_v15, 0.0 }
  0xc1   :  { %v154_v17 = vpop.f32.mrf.mxu0  ;;  %594 = vmatmul.msk.f32.gmra.mxu2 %vm330_vm3, %v316_v16 }
  0xc2   :  { %v268_v18 = vpop.f32.mrf.mxu1 }
  0xc3   :  { %v269_v19 = vadd.f32 %v268_v18, %v154_v17 }
  0xc5   :  { %v301_v20 = vadd.f32 %v841_v41, %v269_v19 }
  0xc7   :  { %v317_v21 = vmax.f32 %v301_v20, 0.0 }
  0xc9   :  { %v157_v22 = vpop.f32.mrf.mxu0  ;;  %595 = vmatmul.msk.f32.gmra.mxu2 %vm330_vm3, %v317_v21 }
  0xca   :  { %v271_v23 = vpop.f32.mrf.mxu1 }
  0xcb   :  { %v272_v24 = vadd.f32 %v271_v23, %v157_v22 }
  0xcd   :  { %v302_v25 = vadd.f32 %v841_v41, %v272_v24 }
  0xcf   :  { %v318_v26 = vmax.f32 %v302_v25, 0.0 }
  0xd1   :  { %v160_v27 = vpop.f32.mrf.mxu0  ;;  %596 = vmatmul.msk.f32.gmra.mxu2 %vm330_vm3, %v318_v26 }
  0xd2   :  { %v274_v28 = vpop.f32.mrf.mxu1 }
  0xd3   :  { %v275_v29 = vadd.f32 %v274_v28, %v160_v27 }
  0xd5   :  { %v303_v30 = vadd.f32 %v841_v41, %v275_v29 }
  0xd7   :  { %v319_v31 = vmax.f32 %v303_v30, 0.0  ;;  %v649_v30 = vmov 0  }
  0xd8   :  { %622 = vset.pattern.permute.xlu0 %v649_v30 }
  0xd9   :  { %v163_v32 = vpop.f32.mrf.mxu0  ;;  %597 = vmatmul.msk.f32.gmra.mxu2 %vm330_vm3, %v319_v31  ;;  %532 = vperm.xlu0 %622, %v838_v39  }
  0xda   :  { %v277_v33 = vpop.f32.mrf.mxu1 }
  0xdb   :  { %v278_v34 = vadd.f32 %v277_v33, %v163_v32 }
  0xdd   :  { %v304_v35 = vadd.f32 %v841_v41, %v278_v34 }
  0xdf   :  { %v320_v36 = vmax.f32 %v304_v35, 0.0 }
  0xe1   :  { %v166_v37 = vpop.f32.mrf.mxu0  ;;  %598 = vmatmul.msk.f32.gmra.mxu2 %vm330_vm3, %v320_v36 }
  0xe2   :  { %v280_v38 = vpop.f32.mrf.mxu1 }
  0xe3   :  { %v281_v40 = vadd.f32 %v280_v38, %v166_v37 }
  0xe5   :  { %v305_v42 = vadd.f32 %v841_v41, %v281_v40 }
  0xe7   :  { %v321_v43 = vmax.f32 %v305_v42, 0.0 }
  0xe9   :  { %v169_v44 = vpop.f32.mrf.mxu0  ;;  %599 = vmatmul.msk.f32.gmra.mxu2 %vm330_vm3, %v321_v43 }
  0xea   :  { %v283_v45 = vpop.f32.mrf.mxu1 }
  0xeb   :  { %v284_v46 = vadd.f32 %v283_v45, %v169_v44 }
  0xed   :  { %v306_v47 = vadd.f32 %v841_v41, %v284_v46 }
  0xef   :  { %v322_v48 = vmax.f32 %v306_v47, 0.0 }
  0xf1   :  { %v172_v49 = vpop.f32.mrf.mxu0  ;;  %600 = vmatmul.msk.f32.gmra.mxu2 %vm330_vm3, %v322_v48 }
  0xf2   :  { %v286_v50 = vpop.f32.mrf.mxu1 }
  0xf3   :  { %v287_v51 = vadd.f32 %v286_v50, %v172_v49 }
  0xf5   :  { %v307_v52 = vadd.f32 %v841_v41, %v287_v51 }
  0xf7   :  { %v323_v53 = vmax.f32 %v307_v52, 0.0 }
  0xf9   :  { %v175_v54 = vpop.f32.mrf.mxu0  ;;  %601 = vmatmul.msk.f32.gmra.mxu2 %vm330_vm3, %v323_v53 }
  0xfa   :  { %v289_v55 = vpop.f32.mrf.mxu1 }
  0xfb   :  { %v290_v56 = vadd.f32 %v289_v55, %v175_v54 }
  0xfd   :  { %v308_v57 = vadd.f32 %v841_v41, %v290_v56  ;;  %v329_v41 = vperm.slane %v838_v39, 1 }
  0xff   :  { %v324_v58 = vmax.f32 %v308_v57, 0.0 }
 0x101   :  { %602 = vmatmul.msk.f32.gmra.mxu2 %vm330_vm3, %v324_v58 }
 0x10c   :  { %v875_v59 = vpop.f32.mrf.mxu2 }
 0x10d   :  { %v397_v43 = vadd.f32 %v875_v59, %v329_v41 }
 0x10f   :  { %v444_v45 = vmax.f32 %v397_v43, 0.0 }
 0x114   :  { %v399_v60 = vpop.f32.mrf.mxu2 }
 0x115   :  { %v400_v40 = vadd.f32 %v399_v60, %v329_v41 }
 0x117   :  { %v445_v44 = vmax.f32 %v400_v40, 0.0 }
 0x11c   :  { %v402_v61 = vpop.f32.mrf.mxu2 }
 0x11d   :  { %v403_v37 = vadd.f32 %v402_v61, %v329_v41 }
 0x11f   :  { %v446_v42 = vmax.f32 %v403_v37, 0.0 }
 0x124   :  { %v405_v62 = vpop.f32.mrf.mxu2 }
 0x125   :  { %v406_v35 = vadd.f32 %v405_v62, %v329_v41 }
 0x127   :  { %v447_v38 = vmax.f32 %v406_v35, 0.0 }
 0x12c   :  { %v408_v63 = vpop.f32.mrf.mxu2 }
 0x12d   :  { %v409_v33 = vadd.f32 %v408_v63, %v329_v41 }
 0x12f   :  { %v448_v36 = vmax.f32 %v409_v33, 0.0 }
 0x134   :  { %v411_v0 = vpop.f32.mrf.mxu2 }
 0x135   :  { %v412_v31 = vadd.f32 %v411_v0, %v329_v41 }
 0x137   :  { %v449_v34 = vmax.f32 %v412_v31, 0.0 }
 0x13c   :  { %v414_v1 = vpop.f32.mrf.mxu2 }
 0x13d   :  { %v415_v28 = vadd.f32 %v414_v1, %v329_v41 }
 0x13f   :  { %v450_v32 = vmax.f32 %v415_v28, 0.0 }
 0x144   :  { %v417_v2 = vpop.f32.mrf.mxu2 }
 0x145   :  { %v418_v26 = vadd.f32 %v417_v2, %v329_v41 }
 0x147   :  { %v451_v29 = vmax.f32 %v418_v26, 0.0 }
 0x14b   :  { %v533_v46 = vpop.permute.xlu0 %532 }
 0x14c   :  { %v420_v3 = vpop.f32.mrf.mxu2  ;;  %v534_v47 = vrot.slane %v533_v46, 1 }
 0x14d   :  { %v421_v24 = vadd.f32 %v420_v3, %v329_v41 }
 0x14f   :  { %v452_v27 = vmax.f32 %v421_v24, 0.0 }
 0x154   :  { %v423_v4 = vpop.f32.mrf.mxu2 }
 0x155   :  { %v424_v22 = vadd.f32 %v423_v4, %v329_v41 }
 0x157   :  { %v453_v25 = vmax.f32 %v424_v22, 0.0 }
 0x15c   :  { %v426_v5 = vpop.f32.mrf.mxu2 }
 0x15d   :  { %v427_v20 = vadd.f32 %v426_v5, %v329_v41 }
 0x15f   :  { %v454_v23 = vmax.f32 %v427_v20, 0.0 }
 0x164   :  { %v429_v6 = vpop.f32.mrf.mxu2 }
 0x165   :  { %v430_v18 = vadd.f32 %v429_v6, %v329_v41 }
 0x167   :  { %v455_v21 = vmax.f32 %v430_v18, 0.0 }
 0x16c   :  { %v432_v7 = vpop.f32.mrf.mxu2 }
 0x16d   :  { %v433_v16 = vadd.f32 %v432_v7, %v329_v41 }
 0x16f   :  { %v456_v19 = vmax.f32 %v433_v16, 0.0 }
 0x174   :  { %v435_v8 = vpop.f32.mrf.mxu2 }
 0x175   :  { %v436_v14 = vadd.f32 %v435_v8, %v329_v41 }
 0x177   :  { %v457_v17 = vmax.f32 %v436_v14, 0.0 }
 0x17c   :  { %v438_v9 = vpop.f32.mrf.mxu2 }
 0x17d   :  { %v439_v12 = vadd.f32 %v438_v9, %v329_v41 }
 0x17f   :  { %v458_v15 = vmax.f32 %v439_v12, 0.0 }
 0x184   :  { %v441_v10 = vpop.f32.mrf.mxu2 }
 0x185   :  { %v442_v11 = vadd.f32 %v441_v10, %v329_v41 }
 0x187   :  { %v459_v13 = vmax.f32 %v442_v11, 0.0 }
 0x189   :  { %603 = vmatpush.xpose.msk.msra.mxu3 %vm330_vm3, %v459_v13 }
 0x18d   :  { %604 = vmatpush.xpose.msk.msra.mxu3 %vm330_vm3, %v458_v15 }
 0x191   :  { %605 = vmatpush.xpose.msk.msra.mxu3 %vm330_vm3, %v457_v17 }
 0x195   :  { %606 = vmatpush.xpose.msk.msra.mxu3 %vm330_vm3, %v456_v19 }
 0x199   :  { %607 = vmatpush.xpose.msk.msra.mxu3 %vm330_vm3, %v455_v21 }
 0x19d   :  { %608 = vmatpush.xpose.msk.msra.mxu3 %vm330_vm3, %v454_v23 }
 0x1a1   :  { %609 = vmatpush.xpose.msk.msra.mxu3 %vm330_vm3, %v453_v25 }
 0x1a5   :  { %610 = vmatpush.xpose.msk.msra.mxu3 %vm330_vm3, %v452_v27 }
 0x1a9   :  { %611 = vmatpush.xpose.msk.msra.mxu3 %vm330_vm3, %v451_v29 }
 0x1ad   :  { %612 = vmatpush.xpose.msk.msra.mxu3 %vm330_vm3, %v450_v32 }
 0x1b1   :  { %613 = vmatpush.xpose.msk.msra.mxu3 %vm330_vm3, %v449_v34 }
 0x1b5   :  { %614 = vmatpush.xpose.msk.msra.mxu3 %vm330_vm3, %v448_v36 }
 0x1b9   :  { %615 = vmatpush.xpose.msk.msra.mxu3 %vm330_vm3, %v447_v38 }
 0x1bd   :  { %616 = vmatpush.xpose.msk.msra.mxu3 %vm330_vm3, %v446_v42 }
 0x1c1   :  { %617 = vmatpush.xpose.msk.msra.mxu3 %vm330_vm3, %v445_v44 }
 0x1c5   :  { %618 = vmatpush.xpose.msk.msra.mxu3 %vm330_vm3, %v444_v45 }
 0x1c8   :  { %619 = vmatmul.msk.f32.vlgmr.msra.gmra.mxu3 %vm330_vm3, %v838_v39 }
 0x24b   :  { %v528_v48 = vpop.f32.mrf.mxu3 }
 0x24c   :  { %v536_v49 = vadd.f32 %v534_v47, %v528_v48 }
 0x24e   :  { %537 = vst [vmem:[#allocation2 - $0x2] sm:$0x4] %v536_v49 }
 0x24f   :  { %548 = dma.vmem_to_hbm [thread:$0]  %s544_s1, 16, %s546_s23, [#allocation3]  }
 0x250   :  { %647 = dma.done.wait [#allocation3], 16  }
 0x251   :  { %648 = vsyncadd [#allocation3], 4294967280 }
 0x252   :  { %553 = vsyncpa [#allocation3], 1 }

</bundles_post_ra>
